<compile_context>
chip_gen: v7x
topology: tpu7x:2x2x1
jax: 0.10.0
libtpu: 0.0.40
codegen_flags: <defaults>
</compile_context>

<pallas_src>
import math

import jax
import jax.numpy as jnp
from jax.experimental import pallas as pl
from jax.experimental.pallas import tpu as pltpu


def bi_interaction_kernel(x_ref, vt_ref, vt2_ref, out_ref):
    # x_ref:   (tb, n)  batch tile (native dtype)
    # vt_ref:  (n, k)   v transposed          -- resident across the grid
    # vt2_ref: (n, k)   (v*v) transposed      -- resident across the grid
    # out_ref: (tb, k)
    x = x_ref[...].astype(jnp.float32)
    vt = vt_ref[...].astype(jnp.float32)
    vt2 = vt2_ref[...].astype(jnp.float32)

    p1 = jnp.dot(x, vt, preferred_element_type=jnp.float32)        # (tb, k)
    p2 = jnp.dot(x * x, vt2, preferred_element_type=jnp.float32)   # (tb, k)
    out_ref[...] = (0.5 * (p1 * p1 - p2)).astype(out_ref.dtype)


def bi_interaction_forward(x, v, *, tb=256):
    """x: (B, n) in its native dtype. v: (k, n). Returns (B, k) in x.dtype."""
    B, n = x.shape
    k, n_v = v.shape
    assert n == n_v, "feature dims of x and v must match"

    # Batch tile: multiple of 8 sublanes, no larger than the (padded) batch.
    tb = max(8, min(tb, pl.cdiv(B, 8) * 8))
    Bp = pl.cdiv(B, tb) * tb
    x_in = x if Bp == B else jnp.pad(x, ((0, Bp - B), (0, 0)))

    vt = jnp.swapaxes(v, 0, 1)        # (n, k)
    vt2 = jnp.swapaxes(v * v, 0, 1)   # (n, k)

    out = pl.pallas_call(
        bi_interaction_kernel,
        out_shape=jax.ShapeDtypeStruct((Bp, k), x.dtype),
        grid_spec=pl.GridSpec(
            grid=(Bp // tb,),
            in_specs=[
                pl.BlockSpec((tb, n), lambda i: (i, 0)),   # batch tile of x
                pl.BlockSpec((n, k), lambda i: (0, 0)),    # v^T, stays resident
                pl.BlockSpec((n, k), lambda i: (0, 0)),    # (v^2)^T, stays resident
            ],
            out_specs=pl.BlockSpec((tb, k), lambda i: (i, 0)),
        ),
        compiler_params=pltpu.CompilerParams(
            dimension_semantics=("parallel",)),
    )(x_in, vt, vt2)

    return out if Bp == B else out[:B]


if __name__ == "__main__":
    # Small shapes consistent with the module: B=16 samples, n=32 features,
    # k=16 latent factors.
    n, k, B = 32, 16, 16
    key = jax.random.PRNGKey(0)
    kx, kv = jax.random.split(key)

    # Deterministic xavier_uniform init for v of shape (k, n):
    # fan_in = n, fan_out = k  ->  bound = sqrt(6 / (n + k))
    bound = math.sqrt(6.0 / (n + k))
    v = jax.random.uniform(kv, (k, n), jnp.float32, -bound, bound)
    x = jax.random.normal(kx, (B, n), jnp.float32)

    out = jax.block_until_ready(bi_interaction_forward(x, v))

    # Pure-JAX reference following the literal PyTorch formulation.
    p1 = x @ v.T
    p2 = (x ** 2) @ (v.T ** 2)
    ref = 0.5 * (p1 ** 2 - p2)

    assert out.shape == (B, k)
    assert jnp.allclose(out, ref, atol=1e-4, rtol=1e-4), "mismatch vs reference"
    print("KERNEL_OK")
</pallas_src>

<mosaic_0001>
module attributes {stable_mosaic.version = 11 : i64} {
  func.func @bi_interaction_kernel(%arg0: i32, %arg1: memref<16x32xf32, #tpu.memory_space<vmem>>, %arg2: memref<32x16xf32, #tpu.memory_space<vmem>>, %arg3: memref<32x16xf32, #tpu.memory_space<vmem>>, %arg4: memref<16x16xf32, #tpu.memory_space<vmem>>) attributes {dimension_semantics = [#tpu.dimension_semantics<parallel>], iteration_bounds = array<i64: 1>, scalar_prefetch = 0 : i64, scratch_operands = 0 : i64, tpu.core_type = #tpu.core_type<tc>, window_params = [{transform_indices = @transform_0, window_bounds = array<i64: 16, 32>}, {pipeline_mode = #tpu.pipeline_mode<synchronous>, transform_indices = @transform_1, window_bounds = array<i64: 32, 16>}, {pipeline_mode = #tpu.pipeline_mode<synchronous>, transform_indices = @transform_2, window_bounds = array<i64: 32, 16>}, {transform_indices = @transform_3, window_bounds = array<i64: 16, 16>}]} {
    %c0 = arith.constant 0 : index
    %c0_0 = arith.constant 0 : index
    %0 = vector.load %arg1[%c0, %c0_0] : memref<16x32xf32, #tpu.memory_space<vmem>>, vector<16x32xf32>
    %c0_1 = arith.constant 0 : index
    %c0_2 = arith.constant 0 : index
    %1 = vector.load %arg2[%c0_1, %c0_2] : memref<32x16xf32, #tpu.memory_space<vmem>>, vector<32x16xf32>
    %c0_3 = arith.constant 0 : index
    %c0_4 = arith.constant 0 : index
    %2 = vector.load %arg3[%c0_3, %c0_4] : memref<32x16xf32, #tpu.memory_space<vmem>>, vector<32x16xf32>
    %cst = arith.constant dense<0.000000e+00> : vector<16x16xf32>
    %3 = tpu.matmul %0, %1, %cst {dimension_numbers = #tpu.dot_dimension_numbers<[1], [0], [0], [1], [0, 0, 1, 1], [], []>} : vector<16x32xf32>, vector<32x16xf32>, vector<16x16xf32> -> vector<16x16xf32>
    %4 = arith.mulf %0, %0 : vector<16x32xf32>
    %cst_5 = arith.constant dense<0.000000e+00> : vector<16x16xf32>
    %5 = tpu.matmul %4, %2, %cst_5 {dimension_numbers = #tpu.dot_dimension_numbers<[1], [0], [0], [1], [0, 0, 1, 1], [], []>} : vector<16x32xf32>, vector<32x16xf32>, vector<16x16xf32> -> vector<16x16xf32>
    %6 = arith.mulf %3, %3 : vector<16x16xf32>
    %7 = arith.subf %6, %5 : vector<16x16xf32>
    %cst_6 = arith.constant 5.000000e-01 : f32
    %8 = vector.broadcast %cst_6 : f32 to vector<16x16xf32>
    %9 = arith.mulf %8, %7 : vector<16x16xf32>
    %c0_7 = arith.constant 0 : index
    %c0_8 = arith.constant 0 : index
    %10 = vector.load %arg4[%c0_7, %c0_8] : memref<16x16xf32, #tpu.memory_space<vmem>>, vector<16x16xf32>
    tpu.vector_store %arg4[%c0_7, %c0_8], %9 {strides = array<i32>} : memref<16x16xf32, #tpu.memory_space<vmem>>, vector<16x16xf32>,
    return
  }
  func.func @transform_0(%arg0: i32) -> (i32, i32) {
    %c0_i32 = arith.constant 0 : i32
    %c0_i32_0 = arith.constant 0 : i32
    return %arg0, %c0_i32 : i32, i32
  }
  func.func @transform_1(%arg0: i32) -> (i32, i32) {
    %c0_i32 = arith.constant 0 : i32
    %c0_i32_0 = arith.constant 0 : i32
    %c0_i32_1 = arith.constant 0 : i32
    return %c0_i32, %c0_i32_0 : i32, i32
  }
  func.func @transform_2(%arg0: i32) -> (i32, i32) {
    %c0_i32 = arith.constant 0 : i32
    %c0_i32_0 = arith.constant 0 : i32
    %c0_i32_1 = arith.constant 0 : i32
    return %c0_i32, %c0_i32_0 : i32, i32
  }
  func.func @transform_3(%arg0: i32) -> (i32, i32) {
    %c0_i32 = arith.constant 0 : i32
    %c0_i32_0 = arith.constant 0 : i32
    return %arg0, %c0_i32 : i32, i32
  }
}

</mosaic_0001>

<bundles_post_ra>
// kernel: tpu_custom_call.1
= control target key start
LH: loop header
LB: loop body
LE: loop exit
PB: predicated region body
PF: predicated region fallthrough
CT: control target
= control target key end

     0   :  { %vm25_vm0 = vcmask 261120   ;;  %s365_s0 = inlined_call_operand.vmem [shape: f32[16,32], index: 0, kind: input, shape index: {}]   ;;  %s366_s1 = inlined_call_operand.vmem [shape: f32[32,16], index: 1, kind: input, shape index: {}]   ;;  %s367_s2 = inlined_call_operand.vmem [shape: f32[32,16], index: 2, kind: input, shape index: {}]   ;;  %s368_s3 = inlined_call_operand.hbm [shape: f32[16,16], index: 3, kind: output, shape index: {}]  }
   0x1   :  { %v17_v0 = vld [vmem:[%s366_s1] sm:$0xff]  ;;  %v18_v1 = vld [vmem:[%s366_s1 + $0x8] sm:$0xff]  ;;  %v19_v5 = vld [vmem:[%s366_s1 + $0x10] sm:$0xff] }
   0x2   :  { %v21_v2 = vld [vmem:[%s367_s2] sm:$0xff]  ;;  %v253_v3 = vpack.c.bf16 %v18_v1, %v17_v0  ;;  %v22_v4 = vld [vmem:[%s367_s2 + $0x8] sm:$0xff]  ;;  %v20_v6 = vld [vmem:[%s366_s1 + $0x18] sm:$0xff] }
   0x3   :  { %v261_v7 = vpack.c.bf16 %v22_v4, %v21_v2  ;;  %v257_v8 = vpack.c.bf16 %v20_v6, %v19_v5  ;;  %v23_v9 = vld [vmem:[%s367_s2 + $0x10] sm:$0xff]  ;;  %v24_v10 = vld [vmem:[%s367_s2 + $0x18] sm:$0xff]  ;;  %v15_v11 = vld [vmem:[%s365_s0] sm:$0xff] }
   0x4   :  { %254 = vmatprep.subr.bf16.mxu0 %v253_v3  ;;  %v265_v12 = vpack.c.bf16 %v24_v10, %v23_v9  ;;  %239 = vmatprep.mubr.msk.f32.mxu0 %vm25_vm0, %v15_v11  ;;  %v107_v13 = vmul.f32 %v15_v11, %v15_v11 }
   0x5   :  { %8 = vsyncpa [#allocation3], 0  ;;  %256 = vmatpush3.bf16.msra.mxu0 %v253_v3  ;;  %262 = vmatprep.subr.bf16.mxu1 %v261_v7  ;;  %v16_v14 = vld [vmem:[%s365_s0 + $0x8] sm:$0xff]  ;;  %s296_s2 = smov [#allocation2]   ;;  %vm196_vm1 = vcmask 130048  }
   0x6   :  { %264 = vmatpush3.bf16.msra.mxu1 %v261_v7  ;;  %258 = vmatprep.subr.bf16.mxu0 %v257_v8  ;;  %v108_v15 = vmul.f32 %v16_v14, %v16_v14  ;;  %s204_s4 = sshll.u32 %s296_s2, 4  ;;  %s205_s4 = int_to_ptr.vmem [resolvable:$true] %s204_s4 }
   0x7   :  { %266 = vmatprep.subr.bf16.mxu1 %v265_v12  ;;  %250 = vmatprep.mubr.msk.f32.mxu1 %vm25_vm0, %v107_v13  ;;  %s272_s0 = scalar_lea.vmem %s205_s4, 256  ;;  %p277_p1 = scmp.lt.s32.totalorder %s205_s4, %s205_s4 }
   0x8   :  { %p273_p0 = scmp.ne.s32.totalorder %s205_s4, %s272_s0  ;;  %p278_p2 = scmp.lt.s32.totalorder %s272_s0, %s272_s0 }
   0x9   :  { %260 = vmatpush3.bf16.msra.mxu0 %v257_v8 }
   0xa   :  { %268 = vmatpush3.bf16.msra.mxu1 %v265_v12  ;;  %p279_p3 = por %p278_p2, %p277_p1 }
   0xc   :  { %240 = vmatmul.mubr.msk.f32.vlgmr.msra.gmra.mrb[0].mxu0 %vm25_vm0, %v16_v14  ;;  %p280_p4 = pnand %p279_p3, %p273_p0 }
   0xd   :  { %251 = vmatmul.mubr.msk.f32.vlgmr.msra.gmra.mrb[0].mxu1 %vm25_vm0, %v108_v15 }
  0xdf   :  { %v241_v16 = vpop.f32.mrb[0].mxu0 }
  0xe0   :  { %v191_v17 = vmul.f32 %v241_v16, %v241_v16  ;;  %v98_v18 = vpop.f32.mrb[1].mxu0  ;;  %v252_v19 = vpop.f32.mrb[0].mxu1 }
  0xe1   :  { %v190_v20 = vmul.f32 %v98_v18, %v98_v18  ;;  %v181_v21 = vpop.f32.mrb[1].mxu1 }
  0xe2   :  { %v193_v22 = vsub.f32 %v191_v17, %v252_v19 }
  0xe3   :  { %v192_v23 = vsub.f32 %v190_v20, %v181_v21 }
  0xe4   :  { %v195_v24 = vmul.f32 0.5, %v193_v22 }
  0xe5   :  { %v194_v25 = vmul.f32 0.5, %v192_v23 }
  0xe6   :  { %198 = vst.msk [vmem:[#allocation2 + $0x8] sm:$0xff] %vm196_vm1, %v195_v24 }
  0xe7   :  { %197 = vst.msk [vmem:[#allocation2] sm:$0xff] %vm196_vm1, %v194_v25 }
  0xe8   :  { %283 = shalt.err (!%p280_p4)
}
  0xe9   :  { %s284_s7 = scalar_lea.hbm %s368_s3, 256 }
  0xea   :  { %p285_p5 = scmp.ne.s32.totalorder %s368_s3, %s284_s7  ;;  %p288_p6 = scmp.lt.u32.totalorder %s284_s7, %s368_s3 }
  0xec   :  { %p290_p7 = pnand %p288_p6, %p285_p5 }
  0xee   :  { %293 = shalt.err (!%p290_p7)
}
  0xef   :  { %s297_s12 = smov 128   ;;  %s298_s13 = smov 8  }
  0xf0   :  { %210 = dma.vmem_to_hbm [thread:$0]  %s205_s4, 256, %s368_s3, [#allocation3], %s297_s12, %s297_s12, %s298_s13  }
  0xf1   :  { %294 = dma.done.wait [#allocation3], 256  }
  0xf2   :  { %295 = vsyncadd [#allocation3], 4294967040 }
  0xf3   :  { %214 = vsyncpa [#allocation3], 1 }

</bundles_post_ra>
